<compile_context>
chip_gen: v5e
topology: v5e:2x2
jax: 0.10.0
libtpu: 0.0.40
codegen_flags: <defaults>
</compile_context>

<pallas_src>
import functools

import jax
import jax.numpy as jnp
from jax import lax
from jax.experimental import pallas as pl
from jax.experimental.pallas import tpu as pltpu


_NEG_INF = -1e30  # large finite negative: avoids inf arithmetic / NaN risk


def _round_up(a, m):
    return (a + m - 1) // m * m


def _flash_causal_kernel(qi_tab_ref, ki_tab_ref, q_ref, k_ref, v_ref, o_ref,
                         m_scr, l_scr, acc_scr, *, tile):
    """One (batch, triangular-step) grid iteration of causal flash attention.

    qi_tab_ref, ki_tab_ref : SMEM int32 tables, flat step -> (qi, ki)
    q_ref : (1, tile, d_out)  projected, pre-scaled Q block (resident across ki)
    k_ref : (1, tile, d_out)  projected K block for this step
    v_ref : (1, tile, d_out)  projected V block for this step
    o_ref : (1, tile, d_out)  output block (written only on the diagonal step)
    m_scr, l_scr : (tile, 1) f32 running row max / row sum
    acc_scr      : (tile, d_out) f32 output accumulator
    """
    step = pl.program_id(1)
    qi = qi_tab_ref[step]
    ki = ki_tab_ref[step]

    # ---- per-q-block init: reset online-softmax state -----------------------
    @pl.when(ki == 0)
    def _init():
        m_scr[...] = jnp.full_like(m_scr, _NEG_INF)
        l_scr[...] = jnp.zeros_like(l_scr)
        acc_scr[...] = jnp.zeros_like(acc_scr)

    def _update(apply_mask):
        q = q_ref[0]
        k = k_ref[0]
        # S = Q K^T (bf16 operands, f32 accumulation); no transposed K copy.
        s = lax.dot_general(q, k, (((1,), (1,)), ((), ())),
                            preferred_element_type=jnp.float32)  # (tile, tile)

        if apply_mask:
            # Diagonal block only. Global indices handle both the causal
            # strict-upper-triangle and any zero-padded key columns (col >= T).
            row = qi * tile + lax.broadcasted_iota(jnp.int32, s.shape, 0)
            col = ki * tile + lax.broadcasted_iota(jnp.int32, s.shape, 1)
            s = jnp.where(col > row, _NEG_INF, s)

        # Online softmax update; all elementwise math stays f32 (v5e-safe).
        m_prev = m_scr[...]
        m_new = jnp.maximum(m_prev, jnp.max(s, axis=-1, keepdims=True))
        alpha = jnp.exp(m_prev - m_new)
        p = jnp.exp(s - m_new)
        l_scr[...] = alpha * l_scr[...] + jnp.sum(p, axis=-1, keepdims=True)
        acc_scr[...] = alpha * acc_scr[...] + jnp.dot(
            p.astype(v_ref.dtype), v_ref[0], preferred_element_type=jnp.float32)
        m_scr[...] = m_new

    # Strictly-below-diagonal kv blocks: no mask needed.
    @pl.when(ki < qi)
    def _below():
        _update(apply_mask=False)

    # Diagonal block: mask with global indices, then finalize this q block.
    @pl.when(ki == qi)
    def _diag_and_finalize():
        _update(apply_mask=True)
        inv_l = pl.reciprocal(l_scr[...], approx=True)  # EUP slot, denom >= 1
        o_ref[0] = (acc_scr[...] * inv_l).astype(o_ref.dtype)


def causal_attention(x, w_query, w_key, w_value, *, block_size=256,
                     compute_dtype=jnp.bfloat16):
    """x: (b, T, d_in); w_*: (d_in, d_out). Returns (b, T, d_out), dtype of x."""
    b, T, d_in = x.shape
    d_out = w_query.shape[1]
    out_dtype = x.dtype
    scale = 1.0 / (d_out ** 0.5)

    # ---- tile selection / sequence padding ----------------------------------
    tile = min(block_size, _round_up(T, 8))
    t_pad = _round_up(T, tile)
    nq = t_pad // tile

    # ---- hoisted Q/K/V projections (one pass, bf16 MXU operands, f32 acc) ---
    xc = x.astype(compute_dtype)
    q = jnp.dot(xc, w_query.astype(compute_dtype),
                preferred_element_type=jnp.float32) * scale
    k = jnp.dot(xc, w_key.astype(compute_dtype),
                preferred_element_type=jnp.float32)
    v = jnp.dot(xc, w_value.astype(compute_dtype),
                preferred_element_type=jnp.float32)
    q = q.astype(compute_dtype)
    k = k.astype(compute_dtype)
    v = v.astype(compute_dtype)

    if t_pad != T:
        pad = ((0, 0), (0, t_pad - T), (0, 0))
        q = jnp.pad(q, pad)
        k = jnp.pad(k, pad)
        v = jnp.pad(v, pad)

    # ---- triangular (qi, ki) step tables: only ki <= qi steps exist ---------
    qi_list, ki_list = [], []
    for qi in range(nq):
        for ki in range(qi + 1):
            qi_list.append(qi)
            ki_list.append(ki)
    n_steps = len(qi_list)  # nq*(nq+1)//2
    qi_tab = jnp.asarray(qi_list, dtype=jnp.int32)
    ki_tab = jnp.asarray(ki_list, dtype=jnp.int32)

    kernel = functools.partial(_flash_causal_kernel, tile=tile)

    grid_spec = pltpu.PrefetchScalarGridSpec(
        num_scalar_prefetch=2,
        grid=(b, n_steps),
        in_specs=[
            # projected Q block: resident across all ki steps of one q block
            pl.BlockSpec((1, tile, d_out), lambda bb, s, qt, kt: (bb, qt[s], 0)),
            # projected K / V blocks: streamed per step
            pl.BlockSpec((1, tile, d_out), lambda bb, s, qt, kt: (bb, kt[s], 0)),
            pl.BlockSpec((1, tile, d_out), lambda bb, s, qt, kt: (bb, kt[s], 0)),
        ],
        out_specs=pl.BlockSpec((1, tile, d_out),
                               lambda bb, s, qt, kt: (bb, qt[s], 0)),
        scratch_shapes=[
            pltpu.VMEM((tile, 1), jnp.float32),      # running row max
            pltpu.VMEM((tile, 1), jnp.float32),      # running row sum
            pltpu.VMEM((tile, d_out), jnp.float32),  # output accumulator
        ],
    )

    out_padded = pl.pallas_call(
        kernel,
        out_shape=jax.ShapeDtypeStruct((b, t_pad, d_out), out_dtype),
        grid_spec=grid_spec,
        compiler_params=pltpu.CompilerParams(
            # batch is sharded across TensorCores; the triangular step axis
            # carries the accumulator and must stay sequential.
            dimension_semantics=("parallel", "arbitrary"),
        ),
    )(qi_tab, ki_tab, q, k, v)

    return out_padded[:, :T, :]


def causal_attention_ref(x, w_query, w_key, w_value):
    """Plain-JAX reference mirroring the PyTorch forward (eval mode)."""
    q = x @ w_query
    k = x @ w_key
    v = x @ w_value
    scores = jnp.einsum("btd,bsd->bts", q, k)
    T = x.shape[1]
    mask = jnp.triu(jnp.ones((T, T), dtype=bool), k=1)
    scores = jnp.where(mask[None, :, :], -jnp.inf, scores)
    attn = jax.nn.softmax(scores / (q.shape[-1] ** 0.5), axis=-1)
    return attn @ v


if __name__ == "__main__":
    key = jax.random.PRNGKey(0)
    kx, kq, kk, kv = jax.random.split(key, 4)

    # Small shapes consistent with the module: batch=2, seq=8, d_in=32, d_out=16.
    b, T, d_in, d_out = 2, 8, 32, 16
    x = jax.random.normal(kx, (b, T, d_in), dtype=jnp.float32)
    w_query = jax.random.normal(kq, (d_in, d_out), dtype=jnp.float32) * 0.1
    w_key = jax.random.normal(kk, (d_in, d_out), dtype=jnp.float32) * 0.1
    w_value = jax.random.normal(kv, (d_in, d_out), dtype=jnp.float32) * 0.1

    out = jax.block_until_ready(causal_attention(x, w_query, w_key, w_value))
    ref = causal_attention_ref(x, w_query, w_key, w_value)
    assert out.shape == (b, T, d_out)
    # bf16 MXU operands (f32 accumulation) -> relaxed tolerance vs f32 reference.
    assert jnp.allclose(out, ref, atol=2e-2, rtol=2e-2), "mismatch (small shapes)"

    # Second run: non-tile-divisible T exercises sequence padding, the
    # triangular flat grid (multiple q / kv blocks) and online-softmax carry.
    T2 = 300
    x2 = jax.random.normal(kx, (b, T2, d_in), dtype=jnp.float32)
    out2 = jax.block_until_ready(
        causal_attention(x2, w_query, w_key, w_value, block_size=128))
    ref2 = causal_attention_ref(x2, w_query, w_key, w_value)
    assert out2.shape == (b, T2, d_out)
    assert jnp.allclose(out2, ref2, atol=2e-2, rtol=2e-2), "mismatch (tiled/padded)"

    print("KERNEL_OK")
</pallas_src>

<mosaic_0001>
module attributes {stable_mosaic.version = 11 : i64} {
  func.func @_flash_causal_kernel(%arg0: i32, %arg1: i32, %arg2: memref<1xi32, #tpu.memory_space<smem>>, %arg3: memref<1xi32, #tpu.memory_space<smem>>, %arg4: memref<1x8x16xbf16, #tpu.memory_space<vmem>>, %arg5: memref<1x8x16xbf16, #tpu.memory_space<vmem>>, %arg6: memref<1x8x16xbf16, #tpu.memory_space<vmem>>, %arg7: memref<1x8x16xf32, #tpu.memory_space<vmem>>, %arg8: memref<8x1xf32, #tpu.memory_space<vmem>>, %arg9: memref<8x1xf32, #tpu.memory_space<vmem>>, %arg10: memref<8x16xf32, #tpu.memory_space<vmem>>) attributes {dimension_semantics = [#tpu.dimension_semantics<parallel>, #tpu.dimension_semantics<arbitrary>], iteration_bounds = array<i64: 2, 1>, scalar_prefetch = 2 : i64, scratch_operands = 3 : i64, tpu.core_type = #tpu.core_type<tc>, window_params = [{transform_indices = @transform_0, window_bounds = array<i64: 1, 8, 16>}, {transform_indices = @transform_1, window_bounds = array<i64: 1, 8, 16>}, {transform_indices = @transform_2, window_bounds = array<i64: 1, 8, 16>}, {transform_indices = @transform_3, window_bounds = array<i64: 1, 8, 16>}]} {
    %0 = arith.index_cast %arg1 : i32 to index
    %1 = memref.load %arg2[%0] : memref<1xi32, #tpu.memory_space<smem>>
    %2 = arith.index_cast %arg1 : i32 to index
    %3 = memref.load %arg3[%2] : memref<1xi32, #tpu.memory_space<smem>>
    %c0_i32 = arith.constant 0 : i32
    %4 = arith.cmpi eq, %3, %c0_i32 : i32
    %5 = arith.extui %4 : i1 to i32
    %c0_i32_0 = arith.constant 0 : i32
    %6 = arith.cmpi ne, %5, %c0_i32_0 : i32
    scf.if %6 {
      %cst = arith.constant -1.000000e+30 : f32
      %13 = vector.broadcast %cst : f32 to vector<8x1xf32>
      %c0 = arith.constant 0 : index
      %c0_3 = arith.constant 0 : index
      %14 = vector.load %arg8[%c0, %c0_3] : memref<8x1xf32, #tpu.memory_space<vmem>>, vector<8x1xf32>
      tpu.vector_store %arg8[%c0, %c0_3], %13 {strides = array<i32>} : memref<8x1xf32, #tpu.memory_space<vmem>>, vector<8x1xf32>,
      %cst_4 = arith.constant 0.000000e+00 : f32
      %15 = vector.broadcast %cst_4 : f32 to vector<8x1xf32>
      %c0_5 = arith.constant 0 : index
      %c0_6 = arith.constant 0 : index
      %16 = vector.load %arg9[%c0_5, %c0_6] : memref<8x1xf32, #tpu.memory_space<vmem>>, vector<8x1xf32>
      tpu.vector_store %arg9[%c0_5, %c0_6], %15 {strides = array<i32>} : memref<8x1xf32, #tpu.memory_space<vmem>>, vector<8x1xf32>,
      %cst_7 = arith.constant 0.000000e+00 : f32
      %17 = vector.broadcast %cst_7 : f32 to vector<8x16xf32>
      %c0_8 = arith.constant 0 : index
      %c0_9 = arith.constant 0 : index
      %18 = vector.load %arg10[%c0_8, %c0_9] : memref<8x16xf32, #tpu.memory_space<vmem>>, vector<8x16xf32>
      tpu.vector_store %arg10[%c0_8, %c0_9], %17 {strides = array<i32>} : memref<8x16xf32, #tpu.memory_space<vmem>>, vector<8x16xf32>,
    } else {
    }
    %7 = arith.cmpi slt, %3, %1 : i32
    %8 = arith.extui %7 : i1 to i32
    %c0_i32_1 = arith.constant 0 : i32
    %9 = arith.cmpi ne, %8, %c0_i32_1 : i32
    scf.if %9 {
      %c0 = arith.constant 0 : index
      %c0_3 = arith.constant 0 : index
      %c0_4 = arith.constant 0 : index
      %13 = vector.load %arg4[%c0, %c0_3, %c0_4] : memref<1x8x16xbf16, #tpu.memory_space<vmem>>, vector<1x8x16xbf16>
      %14 = vector.shape_cast %13 : vector<1x8x16xbf16> to vector<8x16xbf16>
      %c0_5 = arith.constant 0 : index
      %c0_6 = arith.constant 0 : index
      %c0_7 = arith.constant 0 : index
      %15 = vector.load %arg5[%c0_5, %c0_6, %c0_7] : memref<1x8x16xbf16, #tpu.memory_space<vmem>>, vector<1x8x16xbf16>
      %16 = vector.shape_cast %15 : vector<1x8x16xbf16> to vector<8x16xbf16>
      %cst = arith.constant dense<0.000000e+00> : vector<8x8xf32>
      %17 = tpu.matmul %14, %16, %cst {dimension_numbers = #tpu.dot_dimension_numbers<[1], [1], [0], [0], [0, 0, 1, 0], [], []>} : vector<8x16xbf16>, vector<8x16xbf16>, vector<8x8xf32> -> vector<8x8xf32>
      %c0_8 = arith.constant 0 : index
      %c0_9 = arith.constant 0 : index
      %18 = vector.load %arg8[%c0_8, %c0_9] : memref<8x1xf32, #tpu.memory_space<vmem>>, vector<8x1xf32>
      %cst_10 = arith.constant dense<0xFF800000> : vector<8xf32>
      %19 = vector.multi_reduction <maximumf>, %17, %cst_10 [1] : vector<8x8xf32> to vector<8xf32>
      %20 = vector.shape_cast %19 : vector<8xf32> to vector<8x1xf32>
      %21 = arith.maximumf %18, %20 : vector<8x1xf32>
      %22 = arith.subf %18, %21 : vector<8x1xf32>
      %23 = math.exp %22 : vector<8x1xf32>
      %24 = vector.broadcast %21 : vector<8x1xf32> to vector<8x8xf32>
      %25 = arith.subf %17, %24 : vector<8x8xf32>
      %26 = math.exp %25 : vector<8x8xf32>
      %c0_11 = arith.constant 0 : index
      %c0_12 = arith.constant 0 : index
      %27 = vector.load %arg9[%c0_11, %c0_12] : memref<8x1xf32, #tpu.memory_space<vmem>>, vector<8x1xf32>
      %28 = arith.mulf %23, %27 : vector<8x1xf32>
      %cst_13 = arith.constant dense<0.000000e+00> : vector<8xf32>
      %29 = vector.multi_reduction <add>, %26, %cst_13 [1] : vector<8x8xf32> to vector<8xf32>
      %30 = vector.shape_cast %29 : vector<8xf32> to vector<8x1xf32>
      %31 = arith.addf %28, %30 : vector<8x1xf32>
      %c0_14 = arith.constant 0 : index
      %c0_15 = arith.constant 0 : index
      %32 = vector.load %arg9[%c0_14, %c0_15] : memref<8x1xf32, #tpu.memory_space<vmem>>, vector<8x1xf32>
      tpu.vector_store %arg9[%c0_14, %c0_15], %31 {strides = array<i32>} : memref<8x1xf32, #tpu.memory_space<vmem>>, vector<8x1xf32>,
      %c0_16 = arith.constant 0 : index
      %c0_17 = arith.constant 0 : index
      %33 = vector.load %arg10[%c0_16, %c0_17] : memref<8x16xf32, #tpu.memory_space<vmem>>, vector<8x16xf32>
      %34 = vector.broadcast %23 : vector<8x1xf32> to vector<8x16xf32>
      %35 = arith.mulf %34, %33 : vector<8x16xf32>
      %36 = arith.truncf %26 : vector<8x8xf32> to vector<8x8xbf16>
      %c0_18 = arith.constant 0 : index
      %c0_19 = arith.constant 0 : index
      %c0_20 = arith.constant 0 : index
      %37 = vector.load %arg6[%c0_18, %c0_19, %c0_20] : memref<1x8x16xbf16, #tpu.memory_space<vmem>>, vector<1x8x16xbf16>
      %38 = vector.shape_cast %37 : vector<1x8x16xbf16> to vector<8x16xbf16>
      %cst_21 = arith.constant dense<0.000000e+00> : vector<8x16xf32>
      %39 = tpu.matmul %36, %38, %cst_21 {dimension_numbers = #tpu.dot_dimension_numbers<[1], [0], [0], [1], [0, 0, 1, 1], [], []>} : vector<8x8xbf16>, vector<8x16xbf16>, vector<8x16xf32> -> vector<8x16xf32>
      %40 = arith.addf %35, %39 : vector<8x16xf32>
      %c0_22 = arith.constant 0 : index
      %c0_23 = arith.constant 0 : index
      %41 = vector.load %arg10[%c0_22, %c0_23] : memref<8x16xf32, #tpu.memory_space<vmem>>, vector<8x16xf32>
      tpu.vector_store %arg10[%c0_22, %c0_23], %40 {strides = array<i32>} : memref<8x16xf32, #tpu.memory_space<vmem>>, vector<8x16xf32>,
      %c0_24 = arith.constant 0 : index
      %c0_25 = arith.constant 0 : index
      %42 = vector.load %arg8[%c0_24, %c0_25] : memref<8x1xf32, #tpu.memory_space<vmem>>, vector<8x1xf32>
      tpu.vector_store %arg8[%c0_24, %c0_25], %21 {strides = array<i32>} : memref<8x1xf32, #tpu.memory_space<vmem>>, vector<8x1xf32>,
    } else {
    }
    %10 = arith.cmpi eq, %3, %1 : i32
    %11 = arith.extui %10 : i1 to i32
    %c0_i32_2 = arith.constant 0 : i32
    %12 = arith.cmpi ne, %11, %c0_i32_2 : i32
    scf.if %12 {
      %c0 = arith.constant 0 : index
      %c0_3 = arith.constant 0 : index
      %c0_4 = arith.constant 0 : index
      %13 = vector.load %arg4[%c0, %c0_3, %c0_4] : memref<1x8x16xbf16, #tpu.memory_space<vmem>>, vector<1x8x16xbf16>
      %14 = vector.shape_cast %13 : vector<1x8x16xbf16> to vector<8x16xbf16>
      %c0_5 = arith.constant 0 : index
      %c0_6 = arith.constant 0 : index
      %c0_7 = arith.constant 0 : index
      %15 = vector.load %arg5[%c0_5, %c0_6, %c0_7] : memref<1x8x16xbf16, #tpu.memory_space<vmem>>, vector<1x8x16xbf16>
      %16 = vector.shape_cast %15 : vector<1x8x16xbf16> to vector<8x16xbf16>
      %cst = arith.constant dense<0.000000e+00> : vector<8x8xf32>
      %17 = tpu.matmul %14, %16, %cst {dimension_numbers = #tpu.dot_dimension_numbers<[1], [1], [0], [0], [0, 0, 1, 0], [], []>} : vector<8x16xbf16>, vector<8x16xbf16>, vector<8x8xf32> -> vector<8x8xf32>
      %c8_i32 = arith.constant 8 : i32
      %18 = arith.muli %1, %c8_i32 : i32
      %19 = tpu.iota {dimensions = array<i32: 0>} : vector<8x8xi32>
      %20 = vector.broadcast %18 : i32 to vector<8x8xi32>
      %21 = arith.addi %20, %19 : vector<8x8xi32>
      %c8_i32_8 = arith.constant 8 : i32
      %22 = arith.muli %3, %c8_i32_8 : i32
      %23 = tpu.iota {dimensions = array<i32: 1>} : vector<8x8xi32>
      %24 = vector.broadcast %22 : i32 to vector<8x8xi32>
      %25 = arith.addi %24, %23 : vector<8x8xi32>
      %26 = arith.cmpi sgt, %25, %21 : vector<8x8xi32>
      %cst_9 = arith.constant -1.000000e+30 : f32
      %27 = vector.broadcast %cst_9 : f32 to vector<8x8xf32>
      %28 = arith.select %26, %27, %17 : vector<8x8xi1>, vector<8x8xf32>
      %c0_10 = arith.constant 0 : index
      %c0_11 = arith.constant 0 : index
      %29 = vector.load %arg8[%c0_10, %c0_11] : memref<8x1xf32, #tpu.memory_space<vmem>>, vector<8x1xf32>
      %cst_12 = arith.constant dense<0xFF800000> : vector<8xf32>
      %30 = vector.multi_reduction <maximumf>, %28, %cst_12 [1] : vector<8x8xf32> to vector<8xf32>
      %31 = vector.shape_cast %30 : vector<8xf32> to vector<8x1xf32>
      %32 = arith.maximumf %29, %31 : vector<8x1xf32>
      %33 = arith.subf %29, %32 : vector<8x1xf32>
      %34 = math.exp %33 : vector<8x1xf32>
      %35 = vector.broadcast %32 : vector<8x1xf32> to vector<8x8xf32>
      %36 = arith.subf %28, %35 : vector<8x8xf32>
      %37 = math.exp %36 : vector<8x8xf32>
      %c0_13 = arith.constant 0 : index
      %c0_14 = arith.constant 0 : index
      %38 = vector.load %arg9[%c0_13, %c0_14] : memref<8x1xf32, #tpu.memory_space<vmem>>, vector<8x1xf32>
      %39 = arith.mulf %34, %38 : vector<8x1xf32>
      %cst_15 = arith.constant dense<0.000000e+00> : vector<8xf32>
      %40 = vector.multi_reduction <add>, %37, %cst_15 [1] : vector<8x8xf32> to vector<8xf32>
      %41 = vector.shape_cast %40 : vector<8xf32> to vector<8x1xf32>
      %42 = arith.addf %39, %41 : vector<8x1xf32>
      %c0_16 = arith.constant 0 : index
      %c0_17 = arith.constant 0 : index
      %43 = vector.load %arg9[%c0_16, %c0_17] : memref<8x1xf32, #tpu.memory_space<vmem>>, vector<8x1xf32>
      tpu.vector_store %arg9[%c0_16, %c0_17], %42 {strides = array<i32>} : memref<8x1xf32, #tpu.memory_space<vmem>>, vector<8x1xf32>,
      %c0_18 = arith.constant 0 : index
      %c0_19 = arith.constant 0 : index
      %44 = vector.load %arg10[%c0_18, %c0_19] : memref<8x16xf32, #tpu.memory_space<vmem>>, vector<8x16xf32>
      %45 = vector.broadcast %34 : vector<8x1xf32> to vector<8x16xf32>
      %46 = arith.mulf %45, %44 : vector<8x16xf32>
      %47 = arith.truncf %37 : vector<8x8xf32> to vector<8x8xbf16>
      %c0_20 = arith.constant 0 : index
      %c0_21 = arith.constant 0 : index
      %c0_22 = arith.constant 0 : index
      %48 = vector.load %arg6[%c0_20, %c0_21, %c0_22] : memref<1x8x16xbf16, #tpu.memory_space<vmem>>, vector<1x8x16xbf16>
      %49 = vector.shape_cast %48 : vector<1x8x16xbf16> to vector<8x16xbf16>
      %cst_23 = arith.constant dense<0.000000e+00> : vector<8x16xf32>
      %50 = tpu.matmul %47, %49, %cst_23 {dimension_numbers = #tpu.dot_dimension_numbers<[1], [0], [0], [1], [0, 0, 1, 1], [], []>} : vector<8x8xbf16>, vector<8x16xbf16>, vector<8x16xf32> -> vector<8x16xf32>
      %51 = arith.addf %46, %50 : vector<8x16xf32>
      %c0_24 = arith.constant 0 : index
      %c0_25 = arith.constant 0 : index
      %52 = vector.load %arg10[%c0_24, %c0_25] : memref<8x16xf32, #tpu.memory_space<vmem>>, vector<8x16xf32>
      tpu.vector_store %arg10[%c0_24, %c0_25], %51 {strides = array<i32>} : memref<8x16xf32, #tpu.memory_space<vmem>>, vector<8x16xf32>,
      %c0_26 = arith.constant 0 : index
      %c0_27 = arith.constant 0 : index
      %53 = vector.load %arg8[%c0_26, %c0_27] : memref<8x1xf32, #tpu.memory_space<vmem>>, vector<8x1xf32>
      tpu.vector_store %arg8[%c0_26, %c0_27], %32 {strides = array<i32>} : memref<8x1xf32, #tpu.memory_space<vmem>>, vector<8x1xf32>,
      %c0_28 = arith.constant 0 : index
      %c0_29 = arith.constant 0 : index
      %54 = vector.load %arg9[%c0_28, %c0_29] : memref<8x1xf32, #tpu.memory_space<vmem>>, vector<8x1xf32>
      %55 = tpu.reciprocal %54 {approx = true} : vector<8x1xf32> -> vector<8x1xf32>
      %c0_30 = arith.constant 0 : index
      %c0_31 = arith.constant 0 : index
      %56 = vector.load %arg10[%c0_30, %c0_31] : memref<8x16xf32, #tpu.memory_space<vmem>>, vector<8x16xf32>
      %57 = vector.broadcast %55 : vector<8x1xf32> to vector<8x16xf32>
      %58 = arith.mulf %56, %57 : vector<8x16xf32>
      %c0_32 = arith.constant 0 : index
      %c0_33 = arith.constant 0 : index
      %c0_34 = arith.constant 0 : index
      %59 = vector.load %arg7[%c0_32, %c0_33, %c0_34] : memref<1x8x16xf32, #tpu.memory_space<vmem>>, vector<1x8x16xf32>
      %60 = vector.shape_cast %59 : vector<1x8x16xf32> to vector<8x16xf32>
      %61 = vector.shape_cast %58 : vector<8x16xf32> to vector<1x8x16xf32>
      tpu.vector_store %arg7[%c0_32, %c0_33, %c0_34], %61 {strides = array<i32>} : memref<1x8x16xf32, #tpu.memory_space<vmem>>, vector<1x8x16xf32>,
    } else {
    }
    return
  }
  func.func @transform_0(%arg0: i32, %arg1: i32, %arg2: memref<1xi32, #tpu.memory_space<smem>>, %arg3: memref<1xi32, #tpu.memory_space<smem>>) -> (i32, i32, i32) {
    %0 = arith.index_cast %arg1 : i32 to index
    %1 = memref.load %arg2[%0] : memref<1xi32, #tpu.memory_space<smem>>
    %c0_i32 = arith.constant 0 : i32
    %c0_i32_0 = arith.constant 0 : i32
    return %arg0, %1, %c0_i32 : i32, i32, i32
  }
  func.func @transform_1(%arg0: i32, %arg1: i32, %arg2: memref<1xi32, #tpu.memory_space<smem>>, %arg3: memref<1xi32, #tpu.memory_space<smem>>) -> (i32, i32, i32) {
    %0 = arith.index_cast %arg1 : i32 to index
    %1 = memref.load %arg3[%0] : memref<1xi32, #tpu.memory_space<smem>>
    %c0_i32 = arith.constant 0 : i32
    %c0_i32_0 = arith.constant 0 : i32
    return %arg0, %1, %c0_i32 : i32, i32, i32
  }
  func.func @transform_2(%arg0: i32, %arg1: i32, %arg2: memref<1xi32, #tpu.memory_space<smem>>, %arg3: memref<1xi32, #tpu.memory_space<smem>>) -> (i32, i32, i32) {
    %0 = arith.index_cast %arg1 : i32 to index
    %1 = memref.load %arg3[%0] : memref<1xi32, #tpu.memory_space<smem>>
    %c0_i32 = arith.constant 0 : i32
    %c0_i32_0 = arith.constant 0 : i32
    return %arg0, %1, %c0_i32 : i32, i32, i32
  }
  func.func @transform_3(%arg0: i32, %arg1: i32, %arg2: memref<1xi32, #tpu.memory_space<smem>>, %arg3: memref<1xi32, #tpu.memory_space<smem>>) -> (i32, i32, i32) {
    %0 = arith.index_cast %arg1 : i32 to index
    %1 = memref.load %arg2[%0] : memref<1xi32, #tpu.memory_space<smem>>
    %c0_i32 = arith.constant 0 : i32
    %c0_i32_0 = arith.constant 0 : i32
    return %arg0, %1, %c0_i32 : i32, i32, i32
  }
}

</mosaic_0001>

<bundles_post_ra>
// kernel: tpu_custom_call.1
= control target key start
LH: loop header
LB: loop body
LE: loop exit
PB: predicated region body
PF: predicated region fallthrough
CT: control target
= control target key end

     0   :  { %s1540_s0 = inlined_call_operand.<no memory space> [shape: s32[1], index: 0, kind: input, shape index: {}]   ;;  %s1541_s1 = inlined_call_operand.<no memory space> [shape: s32[1], index: 1, kind: input, shape index: {}]   ;;  %s1542_s2 = inlined_call_operand.hbm [shape: bf16[2,8,16], index: 2, kind: input, shape index: {}]   ;;  %s1543_s3 = inlined_call_operand.hbm [shape: bf16[2,8,16], index: 3, kind: input, shape index: {}]   ;;  %s1544_s4 = inlined_call_operand.hbm [shape: bf16[2,8,16], index: 4, kind: input, shape index: {}]   ;;  %s1545_s5 = inlined_call_operand.hbm [shape: f32[2,8,16], index: 5, kind: output, shape index: {}]  }
   0x1   :  { %1561 = sst [smem:[#allocation30_spill]] %s1543_s3 }
   0x2   :  { %1562 = sst [smem:[#allocation31_spill]] %s1545_s5 }
   0x3   :  { %10 = sst [smem:[#allocation6]] %s1540_s0 }
   0x4   :  { %11 = sst [smem:[#allocation7]] %s1541_s1 }
   0x5   :  { %12 = vsyncpa [#allocation9], 0 }
   0x6   :  { %14 = vsyncpa [#allocation9 + $0x1], 0 }
   0x7   :  { %15 = vsyncpa [#allocation12], 0 }
   0x8   :  { %17 = vsyncpa [#allocation12 + $0x1], 0 }
   0x9   :  { %18 = vsyncpa [#allocation10], 0 }
   0xa   :  { %20 = vsyncpa [#allocation10 + $0x1], 0  ;;  %s1133_s22 = smov 0   ;;  %s1135_s23 = smov 0  }
   0xb   :  { %s1137_s24 = smov 0   ;;  %s1139_s25 = smov 0  }
   0xc   :  { %s1141_s26 = smov 0   ;;  %s1143_s0 = smov 0  }
   0xd   :  { %s1145_s27 = smov 0   ;;  %s1147_s1 = smov 0  }
   0xe   :  { %s1149_s28 = smov 0   ;;  %s1151_s29 = smov 0  }
   0xf   :  { %s1153_s30 = smov 0   ;;  %s1155_s6 = smov 0  }
  0x10   :  { %s1157_s7 = smov 0   ;;  %s1159_s8 = smov 0  }
  0x11   :  { %s1161_s9 = smov 0  }
  0x12 LB: > { %1563 = sst [smem:[#allocation19_spill]] %s1035_s22  ;;  %s1207_s10 = sadd.s32 4294967295, %s1091_s9   ;;  %s1091_s9 = sphi %s1161_s9, %s26_s9   ;;  %s1087_s8 = sphi %s1159_s8, %s1613_s8   ;;  %s1083_s7 = sphi %s1157_s7, %s1625_s7   ;;  %s1079_s6 = sphi %s1155_s6, %s1624_s6   ;;  %s1075_s30 = sphi %s1153_s30, %s1623_s30   ;;  %s1071_s29 = sphi %s1151_s29, %s1622_s29   ;;  %s1067_s28 = sphi %s1149_s28, %s1621_s28   ;;  %s1063_s1 = sphi %s1147_s1, %s1620_s1   ;;  %s1059_s27 = sphi %s1145_s27, %s1609_s27   ;;  %s1055_s0 = sphi %s1143_s0, %s1619_s0   ;;  %s1051_s26 = sphi %s1141_s26, %s1618_s26   ;;  %s1047_s25 = sphi %s1139_s25, %s1617_s25   ;;  %s1043_s24 = sphi %s1137_s24, %s1616_s24   ;;  %s1039_s23 = sphi %s1135_s23, %s1615_s23   ;;  %s1035_s22 = sphi %s1133_s22, %s1614_s22  }
  0x13   : > { %1564 = sst [smem:[#allocation20_spill]] %s1039_s23  ;;  %s649_s11 = sadd.s32 4294967294, %s1091_s9  }
  0x14   : > { %1565 = sst [smem:[#allocation21_spill]] %s1063_s1  ;;  %s38_s12 = sadd.s32 1, %s1087_s8 }
  0x15   : > { %1566 = sst [smem:[#allocation22_spill]] %s1083_s7  ;;  %p1559_p0 = scmp.eq.s32.totalorder %s1091_s9, 0 }
  0x16   : > { %1567 = sst [smem:[#allocation23_spill]] %s1087_s8  ;;  %p40_p1 = scmp.ge.s32.totalorder %s38_s12, 2 }
  0x17   : > { %p1557_p2 = scmp.eq.s32.totalorder %s1207_s10, 0  ;;  %s72_s13 = sld [smem:[#allocation7]] }
  0x18   : > { %s79_s14 = sadd.s32 1, %s1067_s28  ;;  %s1627_s12 = smov (%p40_p1, %s38_s12), 0 }
  0x19   : > { %1568 = sst [smem:[#allocation24_spill]] %s1627_s12  ;;  %p86_p3 = scmp.ne.s32.totalorder %s1067_s28, %s1063_s1 }
  0x1a   : > { %p92_p4 = scmp.ne.s32.totalorder %s1063_s1, %s1059_s27  ;;  %s44_s15 = ssub.s32 %s1087_s8, %s1627_s12 }
  0x1b   : > { %s1221_s16 = sld [smem:[#allocation6]]  ;;  %p1225_p5 = por %p86_p3, %p1559_p0 }
  0x1c   : > { %p1231_p6 = por %p92_p4, %p1557_p2  ;;  %s139_s19 = sadd.s32 1, %s1043_s24 }
  0x1d   : > { %p149_p7 = scmp.ne.s32.totalorder %s1043_s24, %s1039_s23  ;;  %p150_p8 = scmp.eq.s32.totalorder %s1207_s10, 1 }
  0x1e   : > { %s1570_s18 = scalar_select %p1231_p6, 1, 0 }
  0x1f   : > { %p155_p9 = scmp.ne.s32.totalorder %s1039_s23, %s1035_s22  ;;  %p1241_p10 = scmp.eq.s32.totalorder %s44_s15, 0 }
  0x20   : > { %1571 = sst [smem:[#allocation25_spill]] %s1570_s18  ;;  %p1245_p11 = por %p150_p8, %p149_p7 }
  0x21   : > { %p156_p12 = scmp.eq.s32.totalorder %s649_s11, 1  ;;  %p1558_p3 = scmp.lt.s32.totalorder %s1091_s9, 2 }
  0x22   : > { %s1573_s21 = scalar_select %p1245_p11, 1, 0 }
  0x23   : > { %s1252_s27 = scalar_select %p1241_p10, %s1067_s28, %s79_s14  }
  0x24   : > { %1574 = sst [smem:[#allocation26_spill]] %s1573_s21  ;;  %p1254_p13 = por %p156_p12, %p155_p9 }
  0x25   : > { %1575 = sst [smem:[#allocation27_spill]] %s1252_s27  ;;  %s197_s15 = sand.u32 1, %s1091_s9  }
  0x26   : > { %s1576_s12 = scalar_select %p1254_p13, 1, 0 }
  0x27   : > { %s1264_s22 = scalar_select %p1241_p10, %s1043_s24, %s139_s19  }
  0x28   : > { %1577 = sst [smem:[#allocation28_spill]] %s1576_s12  ;;  %s199_s5 = sand.u32 1, %s1067_s28  }
  0x29   : > { %s654_s21 = sshll.u32 %s199_s5, 2  ;;  %s205_s11 = sadd.s32 %s1087_s8, %s72_s13 }
  0x2a   : > { %s1268_s7 = sshll.u32 %s205_s11, 2  ;;  %s1578_s3 = sld [smem:[#allocation30_spill]] }
  0x2b   : > { %s201_s18 = scalar_lea.vmem [#allocation11], %s654_s21  ;;  %p1278_p4 = pnand %p1558_p3, %p1225_p5 }
  0x2c   : > { %s211_s12 = sshll.u32 %s201_s18, 4  ;;  %p237_p8 = scmp.lt.s32.totalorder %s1091_s9, 3  ;;  %s212_s12 = int_to_ptr.vmem [resolvable:$true] %s211_s12 }
  0x2d   : > { %s1284_s5 = scalar_lea.sflag [#allocation12], %s197_s15  ;;  %p843_p12 = pneg %p1278_p4 }
  0x30   : > { %s207_s23 = scalar_lea.hbm %s1578_s3, %s1268_s7  ;;  %s846_s18 = scalar_lea.hbm %s1578_s3, 8 }
  0x31   : > { %s209_s1 = sshll.u32 %s207_s23, 4  ;;  %s210_s1 = int_to_ptr.hbm [resolvable:$true] %s209_s1 }
  0x32   : > { %s839_s13 = sshra.s32 %s210_s1, 4  ;;  %s840_s13 = int_to_ptr.hbm [resolvable:$true] %s839_s13 }
  0x33   : > { %s841_s27 = scalar_lea.hbm %s840_s13, 4  ;;  %p847_p5 = scmp.lt.s32.totalorder %s840_s13, %s1578_s3 }
  0x34   : > { %p842_p9 = scmp.ne.s32.totalorder %s840_s13, %s841_s27  ;;  %p848_p3 = scmp.lt.s32.totalorder %s846_s18, %s841_s27 }
  0x36   : > { %p844_p1 = pnand %p843_p12, %p842_p9  ;;  %p849_p0 = por %p848_p3, %p847_p5 }
  0x38   : > { %p845_p2 = pneg %p844_p1 }
  0x3a   : > { %p850_p7 = pnand %p849_p0, %p845_p2 }
  0x3c   : > { %853 = shalt.err (!%p850_p7)
}
  0x3d   : > { %690 = dma.hbm_to_vmem [thread:$0]  (!%p1278_p4), %s210_s1, 64, %s212_s12, %s1284_s5  }
  0x3e   : > { %p1580_p0 = scmp.ge.s32.totalorder %s1091_s9, 1  ;;  %s49_s14 = sadd.s32 1, %s1079_s6 }
  0x3f   : > { %p56_p1 = scmp.ne.s32.totalorder %s1079_s6, %s1075_s30  ;;  %p1583_p3 = scmp.eq.s32.totalorder %s1091_s9, 0 }
  0x40   : > { %p1301_p2 = pnand %p1580_p0, %p237_p8  ;;  %p62_p9 = scmp.ne.s32.totalorder %s1075_s30, %s1071_s29 }
  0x41   : > { %s1311_s19 = scalar_select %p1241_p10, %s1079_s6, %s49_s14  }
  0x42   : > { %p1315_p7 = por %p1583_p3, %p56_p1  ;;  %s176_s1 = sand.u32 1, %s1079_s6  }
  0x43   : > { %1582 = sst [smem:[#allocation29_spill]] %s1311_s19  ;;  %s184_s12 = sadd.s32 %s1087_s8, %s1221_s16 }
  0x44   : > { %p1585_p4 = scmp.eq.s32.totalorder %s1207_s10, 0  ;;  %s652_s23 = sshll.u32 %s176_s1, 2 }
  0x45   : > { %s653_s17 = sshll.u32 %s184_s12, 2  ;;  %s180_s3 = scalar_lea.vmem [#allocation8], %s652_s23 }
  0x46   : > { %p1326_p8 = por %p1585_p4, %p62_p9  ;;  %s186_s11 = scalar_lea.hbm %s1542_s2, %s653_s17 }
  0x47   : > { %s188_s14 = sshll.u32 %s186_s11, 4  ;;  %s190_s19 = sshll.u32 %s180_s3, 4  ;;  %s189_s14 = int_to_ptr.hbm [resolvable:$true] %s188_s14  ;;  %s191_s19 = int_to_ptr.vmem [resolvable:$true] %s190_s19 }
  0x48   : > { %p1587_p12 = scmp.lt.s32.totalorder %s1091_s9, 2  ;;  %s177_s16 = scalar_lea.sflag [#allocation9], %s176_s1 }
  0x49   : > { %s869_s8 = sshra.s32 %s189_s14, 4  ;;  %s876_s17 = scalar_lea.hbm %s1542_s2, 8  ;;  %s870_s8 = int_to_ptr.hbm [resolvable:$true] %s869_s8 }
  0x4a   : > { %p1337_p5 = pnand %p1587_p12, %p1315_p7  ;;  %s871_s12 = scalar_lea.hbm %s870_s8, 4 }
  0x4b   : > { %p872_p0 = scmp.ne.s32.totalorder %s870_s8, %s871_s12  ;;  %p877_p7 = scmp.lt.s32.totalorder %s870_s8, %s1542_s2 }
  0x4c   : > { %p873_p1 = pneg %p1337_p5  ;;  %p878_p4 = scmp.lt.s32.totalorder %s876_s17, %s871_s12 }
  0x4e   : > { %p874_p3 = pnand %p873_p1, %p872_p0  ;;  %p879_p12 = por %p878_p4, %p877_p7 }
  0x50   : > { %p875_p9 = pneg %p874_p3 }
  0x52   : > { %p880_p13 = pnand %p879_p12, %p875_p9 }
  0x54   : > { %883 = shalt.err (!%p880_p13)
}
  0x55   : > { %687 = dma.hbm_to_vmem [thread:$0]  (!%p1337_p5), %s189_s14, 64, %s191_s19, %s177_s16  }
  0x56   : > { %s109_s8 = sadd.s32 1, %s1055_s0  ;;  %p116_p0 = scmp.ne.s32.totalorder %s1055_s0, %s1051_s26 }
  0x57   : > { %s1357_s1 = scalar_select %p1241_p10, %s1055_s0, %s109_s8  }
  0x58   : > { %p1589_p13 = scmp.eq.s32.totalorder %s1091_s9, 0  ;;  %p122_p3 = scmp.ne.s32.totalorder %s1051_s26, %s1047_s25 }
  0x59   : > { %s220_s21 = sand.u32 1, %s1055_s0   ;;  %s228_s12 = scalar_lea.hbm %s1544_s4, %s1268_s7 }
  0x5a   : > { %p118_p1 = por %p116_p0, %p1589_p13  ;;  %p1590_p9 = scmp.eq.s32.totalorder %s1207_s10, 0 }
  0x5b   : > { %s656_s3 = sshll.u32 %s220_s21, 2  ;;  %s230_s19 = sshll.u32 %s228_s12, 4  ;;  %s231_s19 = int_to_ptr.hbm [resolvable:$true] %s230_s19 }
  0x5c   : > { %p1370_p7 = por %p122_p3, %p1590_p9  ;;  %s222_s14 = scalar_lea.vmem [#allocation13], %s656_s3 }
  0x5d   : > { %s232_s20 = sshll.u32 %s222_s14, 4  ;;  %p1592_p10 = scmp.lt.s32.totalorder %s1091_s9, 2  ;;  %s233_s20 = int_to_ptr.vmem [resolvable:$true] %s232_s20 }
  0x5e   : > { %s899_s25 = sshra.s32 %s231_s19, 4  ;;  %s906_s18 = scalar_lea.hbm %s1544_s4, 8  ;;  %s900_s25 = int_to_ptr.hbm [resolvable:$true] %s899_s25 }
  0x5f   : > { %p1376_p5 = pnand %p1592_p10, %p118_p1  ;;  %s901_s7 = scalar_lea.hbm %s900_s25, 4 }
  0x60   : > { %p902_p4 = scmp.ne.s32.totalorder %s900_s25, %s901_s7  ;;  %p907_p1 = scmp.lt.s32.totalorder %s900_s25, %s1544_s4 }
  0x61   : > { %p903_p12 = pneg %p1376_p5  ;;  %p908_p3 = scmp.lt.s32.totalorder %s906_s18, %s901_s7 }
  0x63   : > { %p904_p0 = pnand %p903_p12, %p902_p4  ;;  %p909_p9 = por %p908_p3, %p907_p1 }
  0x65   : > { %p905_p13 = pneg %p904_p0 }
  0x67   : > { %p910_p10 = pnand %p909_p9, %p905_p13 }
  0x69   : > { %913 = shalt.err (!%p910_p10)
}
  0x6a   : > { %693 = dma.hbm_to_vmem [thread:$0]  (!%p1376_p5), %s231_s19, 64, %s233_s20, %s1284_s5  }
  0x6b   : > { %241 = sbr.rel (%p1301_p2) target bundleno = 1308 (0x51c), region = 32  ;;  %s243_s11 = sand.u32 (!%p1301_p2), 1, %s1075_s30  }
  0x6c   : > { %s1394_s29 = sshll.u32 (!%p1301_p2), %s243_s11, 2  ;;  %s244_s12 = scalar_lea.sflag (!%p1301_p2), [#allocation9], %s243_s11 }
  0x6d   : > { %s247_s3 = scalar_lea.vmem (!%p1301_p2), [#allocation8], %s1394_s29 }
  0x70   : > { %1018 = dma.done.wait (%p1326_p8), %s244_s12, 64  }
  0x71   : > { %1020 = vsyncadd (%p1326_p8), %s244_s12, 4294967232  ;;  %s1594_s14 = sld [smem:[#allocation21_spill]]  ;;  %s253_s5 = sand.u32 1, %s1207_s10  }
  0x72   : > { %s254_s20 = scalar_lea.sflag [#allocation12], %s253_s5 }
  0x77   : > { %s255_s19 = sand.u32 1, %s1594_s14  }
  0x78   : > { %s1403_s15 = sshll.u32 %s255_s19, 2 }
  0x79   : > { %s257_s25 = scalar_lea.vmem [#allocation11], %s1403_s15 }
  0x7a   : > { %1022 = dma.done.wait (%p1231_p6), %s254_s20, 64  }
  0x7b   : > { %1024 = vsyncadd (%p1231_p6), %s254_s20, 4294967232  ;;  %s265_s7 = sand.u32 1, %s1051_s26  }
  0x7c   : > { %s1411_s27 = sshll.u32 %s265_s7, 2 }
  0x7d   : > { %s267_s17 = scalar_lea.vmem [#allocation13], %s1411_s27 }
  0x7e   : > { %1026 = dma.done.wait (%p1370_p7), %s254_s20, 64  }
  0x7f   : > { %1028 = vsyncadd (%p1370_p7), %s254_s20, 4294967232  ;;  %s1596_s10 = sld [smem:[#allocation20_spill]] }
  0x80   : > { %s1419_s18 = sld [smem:[#allocation6]] }
  0x81   : > { %s1425_s21 = sld [smem:[#allocation7]] }
  0x85   : > { %s298_s13 = sand.u32 1, %s1596_s10  }
  0x86   : > { %s1423_s8 = sshll.u32 %s298_s13, 3 }
  0x87   : > { %s300_s11 = scalar_lea.vmem [#allocation14], %s1423_s8  ;;  %p663_p6 = scmp.ne.s32.totalorder %s1425_s21, 0 }
  0x89   : > { %311 = sbr.rel (%p663_p6) target bundleno = 146 (0x92), region = 48 }
  0x8e   : > { %vm312_vm0 = vcmask 7168   ;;  %vm315_vm1 = vcmask 130048   ;;  %v1093_v0 = vmov -1e+30   ;;  %v1094_v1 = vmov 0.0  }
  0x8f   : > { %313 = vst.msk [vmem:[#allocation2] sm:$0xff] %vm312_vm0, %v1093_v0 }
  0x90   : > { %314 = vst.msk [vmem:[#allocation3] sm:$0xff] %vm312_vm0, %v1094_v1 }
  0x91   : > { %316 = vst.msk [vmem:[#allocation4] sm:$0xff] %vm315_vm1, %v1094_v1 }
  0x92 PF: > { %p664_p2 = scmp.ge.s32.totalorder %s1425_s21, %s1419_s18 }
  0x94   : > { %320 = sbr.rel (%p664_p2) target bundleno = 669 (0x29d), region = 52 }
  0x99   : > { %v322_v2 = vld [vmem:[%s257_s25] sm:$0xf]  ;;  %vm323_vm2 = vcmask 130048   ;;  %v321_v4 = vld [vmem:[%s247_s3] sm:$0xf]  ;;  %vm344_vm3 = vcmask 64512  }
  0x9a   : > { %v328_v3 = vsel %vm323_vm2, %v322_v2, 0  ;;  %v1095_v8 = vmov 0   ;;  %v343_v9 = vld [vmem:[#allocation2] sm:$0xff]  ;;  %vm366_vm4 = vcmask 7168   ;;  %v376_v15 = vld [vmem:[%s267_s17] sm:$0xf] }
  0x9b   : > { %337 = vmatpush.bf16.xpose.msra.mxu0 %v328_v3  ;;  %824 = vset.pattern.permute.xlu0 %v1095_v8  ;;  %vm380_vm5 = vcmask 1043456   ;;  %v360_v24 = vld [vmem:[#allocation3] sm:$0xff]  ;;  %v368_v28 = vld [vmem:[#allocation4] sm:$0xff] }
  0x9c   : > { %825 = vset.pattern.permute.xlu1 %v1095_v8  ;;  %v382_v16 = vsel %vm380_vm5, %v376_v15, 0 }
  0x9d   : > { %391 = vmatpush.bf16.msra.mxu1 %v382_v16 }
  0xa2   : > { %665 = vmatmul.msk.bf16.vlgmr.msra.gmra.mxu0 %vm323_vm2, %v321_v4 }
 0x11f   : > { %v339_v5 = vpop.f32.mrf.mxu0 }
 0x120   : > { %v345_v6 = vsel %vm344_vm3, %v339_v5, -inf }
 0x121   : > { %346 = vmax.xlane.f32.xlu0 %v345_v6 }
 0x127   : > { %v341_v7 = vpop.f32.mrf.mxu0 }
 0x194   : > { %v347_v10 = vpop.xlane.xlu0 %346 }
 0x195   : > { %v348_v11 = vmax.f32 %v343_v9, %v347_v10 }
 0x197   : > { %v349_v12 = vsub.f32 %v343_v9, %v348_v11  ;;  %399 = vst.msk [vmem:[#allocation2] sm:$0xff] %vm366_vm4, %v348_v11  ;;  %354 = vperm.xlu0 %824, %v348_v11  }
 0x199   : > { %v350_v13 = vmul.f32 1.442695, %v349_v12 }
 0x19b   : > { %826 = vpow2.f32 %v350_v13 }
 0x1a1   : > { %v827_v14 = vpop.eup %826 }
 0x1a2   : > { %371 = vperm.xlu1 %825, %v827_v14   ;;  %v361_v25 = vmul.f32 %v827_v14, %v360_v24 }
 0x209   : > { %v355_v17 = vpop.permute.xlu0 %354 }
 0x20a   : > { %v357_v18 = vsub.f32 %v339_v5, %v355_v17 }
 0x20c   : > { %v358_v19 = vmul.f32 1.442695, %v357_v18 }
 0x20e   : > { %828 = vpow2.f32 %v358_v19 }
 0x214   : > { %v829_v20 = vpop.eup %828  ;;  %v372_v23 = vpop.permute.xlu1 %371 }
 0x215   : > { %v362_v21 = vsel %vm344_vm3, %v829_v20, 0.0  ;;  %v375_v22 = vpack.c.bf16 %v829_v20, %v829_v20  ;;  %v374_v29 = vmul.f32 %v372_v23, %v368_v28 }
 0x216   : > { %363 = vadd.xlane.f32.xlu1 %v362_v21 }
 0x217   : > { %666 = vmatmul.msk.bf16.vlgmr.msra.gmra.mxu1 %vm344_vm3, %v375_v22 }
 0x289   : > { %v364_v26 = vpop.xlane.xlu1 %363 }
 0x28a   : > { %v365_v27 = vadd.f32 %v364_v26, %v361_v25 }
 0x28c   : > { %367 = vst.msk [vmem:[#allocation3] sm:$0xff] %vm366_vm4, %v365_v27 }
 0x294   : > { %v393_v30 = vpop.f32.mrf.mxu1 }
 0x295   : > { %v397_v31 = vadd.f32 %v393_v30, %v374_v29 }
 0x297   : > { %398 = vst.msk [vmem:[#allocation4] sm:$0xff] %vm323_vm2, %v397_v31 }
 0x29c   : > { %v395_v32 = vpop.f32.mrf.mxu1 }
 0x29d PF: > { %p667_p8 = scmp.ne.s32.totalorder %s1425_s21, %s1419_s18 }
 0x29e   : > { %s669_s23 = sshll.u32 (!%p667_p8), %s1419_s18, 3  ;;  %s670_s12 = sshll.u32 (!%p667_p8), %s1425_s21, 3 }
 0x29f   : > { %403 = sbr.rel (%p667_p8) target bundleno = 1285 (0x505), region = 56 }
 0x2a4   : > { %v405_v33 = vld [vmem:[%s257_s25] sm:$0xf]  ;;  %vm406_vm6 = vcmask 130048   ;;  %v404_v35 = vld [vmem:[%s247_s3] sm:$0xf]  ;;  %v427_v36 = vlaneseq  ;;  %v429_v39 = vstv %s669_s23  ;;  %v434_v40 = vstv %s670_s12  ;;  %v455_v62 = vld [vmem:[#allocation3] sm:$0xff] }
 0x2a5   : > { %v411_v34 = vsel %vm406_vm6, %v405_v33, 0  ;;  %vm439_vm8 = vcmask 64512   ;;  %v1096_v47 = vmov 0   ;;  %v438_v48 = vld [vmem:[#allocation2] sm:$0xff]  ;;  %vm461_vm9 = vcmask 7168   ;;  %v463_v6 = vld [vmem:[#allocation4] sm:$0xff] }
 0x2a6   : > { %420 = vmatpush.bf16.xpose.msra.mxu0 %v411_v34  ;;  %v428_v37 = vshrl.u32 %v427_v36, 7  ;;  %v433_v38 = vand.u32 127, %v427_v36  ;;  %830 = vset.pattern.permute.xlu0 %v1096_v47  ;;  %v471_v52 = vld [vmem:[%s267_s17] sm:$0xf]  ;;  %vm475_vm10 = vcmask 1043456  }
 0x2a7   : > { %831 = vset.pattern.permute.xlu1 %v1096_v47  ;;  %832 = vset.pattern.permute.xlu2 %v1096_v47  ;;  %v477_v53 = vsel %vm475_vm10, %v471_v52, 0 }
 0x2a8   : > { %v430_v41 = vadd.s32 %v429_v39, %v428_v37  ;;  %v435_v42 = vadd.s32 %v434_v40, %v433_v38  ;;  %486 = vmatpush.bf16.msra.mxu1 %v477_v53 }
 0x2aa   : > { %vm436_vm7 = vcmp.gt.s32.totalorder %v435_v42, %v430_v41 }
 0x2ad   : > { %668 = vmatmul.msk.bf16.vlgmr.msra.gmra.mxu0 %vm406_vm6, %v404_v35 }
 0x32a   : > { %v422_v43 = vpop.f32.mrf.mxu0 }
 0x32b   : > { %v437_v44 = vsel %vm436_vm7, -1e+30, %v422_v43 }
 0x32c   : > { %v440_v45 = vsel %vm439_vm8, %v437_v44, -inf }
 0x32d   : > { %441 = vmax.xlane.f32.xlu0 %v440_v45 }
 0x332   : > { %v424_v46 = vpop.f32.mrf.mxu0 }
 0x3a0   : > { %v442_v49 = vpop.xlane.xlu0 %441 }
 0x3a1   : > { %v443_v50 = vmax.f32 %v438_v48, %v442_v49 }
 0x3a3   : > { %v444_v51 = vsub.f32 %v438_v48, %v443_v50  ;;  %494 = vst.msk [vmem:[#allocation2] sm:$0xff] %vm461_vm9, %v443_v50  ;;  %449 = vperm.xlu0 %830, %v443_v50  }
 0x3a5   : > { %v445_v60 = vmul.f32 1.442695, %v444_v51 }
 0x415   : > { %v450_v54 = vpop.permute.xlu0 %449 }
 0x416   : > { %v452_v55 = vsub.f32 %v437_v44, %v450_v54 }
 0x418   : > { %v453_v56 = vmul.f32 1.442695, %v452_v55 }
 0x41a   : > { %833 = vpow2.f32 %v453_v56 }
 0x41b   : > { %835 = vpow2.f32 %v445_v60 }
 0x420   : > { %v834_v57 = vpop.eup %833 }
 0x421   : > { %v457_v58 = vsel %vm439_vm8, %v834_v57, 0.0  ;;  %v470_v59 = vpack.c.bf16 %v834_v57, %v834_v57  ;;  %v836_v61 = vpop.eup %835 }
 0x422   : > { %458 = vadd.xlane.f32.xlu1 %v457_v58  ;;  %v456_v63 = vmul.f32 %v836_v61, %v455_v62 }
 0x423   : > { %671 = vmatmul.msk.bf16.vlgmr.msra.gmra.mxu1 %vm439_vm8, %v470_v59 }
 0x43b   : > { %466 = vperm.xlu1 %831, %v836_v61  }
 0x495   : > { %v459_v0 = vpop.xlane.xlu1 %458 }
 0x496   : > { %v460_v1 = vadd.f32 %v459_v0, %v456_v63 }
 0x498   : > { %462 = vst.msk [vmem:[#allocation3] sm:$0xff] %vm461_vm9, %v460_v1 }
 0x49f   : > { %v495_v2 = vld [vmem:[#allocation3] sm:$0xff] }
 0x4a0   : > { %v488_v3 = vpop.f32.mrf.mxu1  ;;  %837 = vrcp.f32 %v495_v2 }
 0x4a6   : > { %v838_v4 = vpop.eup %837 }
 0x4a7   : > { %500 = vperm.xlu2 %832, %v838_v4  }
 0x4a8   : > { %v490_v5 = vpop.f32.mrf.mxu1 }
 0x4ad   : > { %v467_v7 = vpop.permute.xlu1 %466 }
 0x4ae   : > { %v469_v8 = vmul.f32 %v467_v7, %v463_v6 }
 0x4b0   : > { %v492_v9 = vadd.f32 %v488_v3, %v469_v8 }
 0x4b2   : > { %493 = vst.msk [vmem:[#allocation4] sm:$0xff] %vm406_vm6, %v492_v9 }
 0x4b9   : > { %v497_v10 = vld [vmem:[#allocation4] sm:$0xff] }
 0x501   : > { %v501_v11 = vpop.permute.xlu2 %500 }
 0x502   : > { %v503_v12 = vmul.f32 %v501_v11, %v497_v10 }
 0x504   : > { %504 = vst.msk [vmem:[%s300_s11] sm:$0xff] %vm406_vm6, %v503_v12 }
 0x505 PF: > { %s513_s29 = sld [smem:[#allocation6]]  ;;  %s520_s5 = sshll.u32 %s300_s11, 4  ;;  %s521_s5 = int_to_ptr.vmem [resolvable:$true] %s520_s5 }
 0x506   : > { %s1597_s3 = sld [smem:[#allocation22_spill]]  ;;  %s506_s18 = scalar_lea.sflag [#allocation10], %s298_s13 }
 0x507   : > { %s1600_s7 = sld [smem:[#allocation31_spill]] }
 0x50c   : > { %s516_s19 = sadd.s32 %s1597_s3, %s513_s29 }
 0x50d   : > { %s673_s15 = sshll.u32 %s516_s19, 3  ;;  %s1601_s17 = smov %s1600_s7 }
 0x50e   : > { %s518_s27 = scalar_lea.hbm %s1600_s7, %s673_s15  ;;  %s949_s12 = scalar_lea.hbm %s1601_s17, 16 }
 0x50f   : > { %s522_s10 = sshll.u32 %s518_s27, 4  ;;  %s523_s10 = int_to_ptr.hbm [resolvable:$true] %s522_s10 }
 0x510   : > { %s943_s21 = sshra.s32 %s523_s10, 4  ;;  %s944_s21 = int_to_ptr.hbm [resolvable:$true] %s943_s21 }
 0x511   : > { %s945_s23 = scalar_lea.hbm %s944_s21, 8  ;;  %p950_p12 = scmp.lt.s32.totalorder %s944_s21, %s1601_s17 }
 0x512   : > { %p946_p7 = scmp.ne.s32.totalorder %s944_s21, %s945_s23  ;;  %p951_p0 = scmp.lt.s32.totalorder %s949_s12, %s945_s23 }
 0x514   : > { %p947_p5 = pnand %p946_p7, %p1245_p11  ;;  %p952_p13 = por %p951_p0, %p950_p12 }
 0x516   : > { %p948_p4 = pneg %p947_p5 }
 0x518   : > { %p953_p1 = pnand %p952_p13, %p948_p4 }
 0x51a   : > { %956 = shalt.err (!%p953_p1)
}
 0x51b   : > { %682 = dma.vmem_to_hbm [thread:$0]  (%p1245_p11), %s521_s5, 128, %s523_s10, %s506_s18  }
 0x51c PF: > { %s1602_s13 = sld [smem:[#allocation19_spill]]  ;;  %p1605_p9 = scmp.ge.s32.totalorder %s1091_s9, 2 }
 0x51d   : > { %s1603_s14 = sld [smem:[#allocation28_spill]] }
 0x522   : > { %s534_s19 = sand.u32 1, %s1602_s13  }
 0x523   : > { %p1604_p3 = scmp.ne.s32.totalorder %s1603_s14, 0  ;;  %s535_s15 = scalar_lea.sflag [#allocation10], %s534_s19 }
 0x525   : > { %p695_p10 = pnand %p1605_p9, %p1604_p3 }
 0x527   : > { %p696_p6 = pneg %p695_p10 }
 0x529   : > { %1030 = dma.done.wait (%p696_p6), %s535_s15, 128  }
 0x52a   : > { %1032 = vsyncadd (%p696_p6), %s535_s15, 4294967168  ;;  %s26_s9 = sadd.s32 1, %s1091_s9   ;;  %s1607_s16 = sld [smem:[#allocation20_spill]] }
 0x52b   : > { %p1490_p2 = scmp.ge.s32.totalorder %s26_s9, 4   ;;  %s1608_s5 = smov %s1264_s22 }
 0x52c   : > { %s1609_s27 = sld [smem:[#allocation21_spill]]  ;;  %s1615_s23 = smov %s1043_s24 }
 0x52d   : > { %s1610_s7 = sld [smem:[#allocation27_spill]]  ;;  %s1616_s24 = smov %s1608_s5 }
 0x52e   : > { %s1611_s10 = sld [smem:[#allocation29_spill]]  ;;  %s1617_s25 = smov %s1051_s26 }
 0x52f   : > { %s1612_s18 = sld [smem:[#allocation23_spill]]  ;;  %s1618_s26 = smov %s1055_s0 }
 0x530   : > { %s1613_s8 = sld [smem:[#allocation24_spill]]  ;;  %s1614_s22 = smov %s1607_s16 }
 0x531   : > { %s1619_s0 = smov %s1357_s1  ;;  %s1620_s1 = smov %s1067_s28 }
 0x532   : > { %s1622_s29 = smov %s1075_s30  ;;  %s1623_s30 = smov %s1079_s6 }
 0x533   : > { %s1621_s28 = smov %s1610_s7  ;;  %25 = sbr.rel (!%p1490_p2) target bundleno = 18 (0x12), region = 113 }
 0x534   : > { %s1624_s6 = smov %s1611_s10 }
 0x535   : > { %s1625_s7 = smov %s1612_s18 }
 0x538   :  { %541 = vsyncpa [#allocation9], 1 }
 0x539   :  { %543 = vsyncpa [#allocation9 + $0x1], 1 }
 0x53a   :  { %544 = vsyncpa [#allocation12], 1 }
 0x53b   :  { %546 = vsyncpa [#allocation12 + $0x1], 1 }
 0x53c   :  { %547 = vsyncpa [#allocation10], 1 }
 0x53d   :  { %549 = vsyncpa [#allocation10 + $0x1], 1 }

</bundles_post_ra>
